<compile_context>
chip_gen: v7x
topology: tpu7x:2x2x1
jax: 0.10.0
libtpu: 0.0.40
codegen_flags: <defaults>
</compile_context>

<pallas_src>
import jax
import jax.numpy as jnp
from jax.experimental import pallas as pl
from jax.experimental.pallas import tpu as pltpu

# ----------------------------------------------------------------------------
# Static problem sizes (from the PyTorch module) and packed-slab layout.
# ----------------------------------------------------------------------------
S, H, A = 4, 16, 2            # state_size, hidden_size, action_size
LANES = 128
S_PAD = 8                     # sublane-aligned K dim of first matmul
H_PAD = 128                   # lane-aligned hidden / K dim of second matmul
A_PAD = 128                   # lane-dense output width
NEG_MASK = -1.0e30            # bias for padded action lanes -> exp() == 0

ROW_W1 = 0                    # rows [0, 8)    : W1 padded to (8, 128)
ROW_B1 = 8                    # rows [8, 16)   : b1 in row 8, lanes [0, H)
ROW_W2 = 16                   # rows [16, 144) : W2 padded to (128, 128)
ROW_B2 = 144                  # rows [144,152) : b2 in row 144 (+ mask lanes)
SLAB_ROWS = 152               # multiple of 8


def policy_kernel(x_ref, p_ref, o_ref):
    # x_ref: (TB, S_PAD) state tile, zero-padded in the K dim.
    # p_ref: (SLAB_ROWS, 128) packed parameter slab, VMEM-resident.
    x = x_ref[...]                                      # (TB, 8)
    w1 = p_ref[pl.ds(ROW_W1, S_PAD), :]                 # (8, 128)
    b1 = p_ref[pl.ds(ROW_B1, 1), :]                     # (1, 128)
    w2 = p_ref[pl.ds(ROW_W2, H_PAD), :]                 # (128, 128)
    b2 = p_ref[pl.ds(ROW_B2, 1), :]                     # (1, 128)

    # fc1 + ReLU (padded hidden lanes stay exactly 0: zero W1 cols, zero b1)
    h = jnp.maximum(
        jnp.dot(x, w1, preferred_element_type=jnp.float32) + b1, 0.0)

    # fc2: padded action lanes get bias -1e30 -> vanish under softmax
    logits = jnp.dot(h, w2, preferred_element_type=jnp.float32) + b2

    # numerically stable softmax along the lane (action) axis
    m = jnp.max(logits, axis=1, keepdims=True)
    e = jnp.exp(logits - m)
    denom = jnp.sum(e, axis=1, keepdims=True)
    o_ref[...] = (e * pl.reciprocal(denom, approx=True)).astype(o_ref.dtype)


def pack_params(w1, b1, w2, b2):
    """Pack (W1, b1, W2, b2) into one padded (SLAB_ROWS, 128) f32 slab."""
    w1 = jnp.asarray(w1, jnp.float32).reshape(S, H)
    b1 = jnp.asarray(b1, jnp.float32).reshape(H)
    w2 = jnp.asarray(w2, jnp.float32).reshape(H, A)
    b2 = jnp.asarray(b2, jnp.float32).reshape(A)

    slab = jnp.zeros((SLAB_ROWS, LANES), jnp.float32)
    slab = slab.at[ROW_W1:ROW_W1 + S, :H].set(w1)
    slab = slab.at[ROW_B1, :H].set(b1)
    slab = slab.at[ROW_W2:ROW_W2 + H, :A].set(w2)
    slab = slab.at[ROW_B2, :].set(NEG_MASK)   # mask padded action lanes
    slab = slab.at[ROW_B2, :A].set(b2)
    return slab


def policy_forward(state, params_slab, *, tb=256):
    """state: (B, S) float32. Returns (B, A) action probabilities."""
    B, s_in = state.shape
    assert s_in == S, f"expected state_size={S}, got {s_in}"

    b_pad = ((B + tb - 1) // tb) * tb
    x = jnp.zeros((b_pad, S_PAD), jnp.float32).at[:B, :S].set(
        state.astype(jnp.float32))

    out = pl.pallas_call(
        policy_kernel,
        out_shape=jax.ShapeDtypeStruct((b_pad, A_PAD), jnp.float32),
        grid_spec=pltpu.PrefetchScalarGridSpec(
            num_scalar_prefetch=0,
            grid=(b_pad // tb,),
            in_specs=[
                # state tile: re-DMA'd / pipelined per grid step
                pl.BlockSpec((tb, S_PAD), lambda i: (i, 0)),
                # packed params: constant block index -> loaded once, resident
                pl.BlockSpec((SLAB_ROWS, LANES), lambda i: (0, 0)),
            ],
            out_specs=pl.BlockSpec((tb, A_PAD), lambda i: (i, 0)),
        ),
        compiler_params=pltpu.CompilerParams(
            dimension_semantics=("parallel",)),
    )(x, params_slab)

    return out[:B, :A]


def init_params(key, state_size=S, hidden_size=H, action_size=A):
    # Deterministic synthetic init (PyTorch-default-style uniform bounds).
    k1, k2, k3, k4 = jax.random.split(key, 4)
    bound1 = 1.0 / jnp.sqrt(state_size)
    bound2 = 1.0 / jnp.sqrt(hidden_size)
    w1 = jax.random.uniform(k1, (state_size, hidden_size), jnp.float32, -bound1, bound1)
    b1 = jax.random.uniform(k2, (1, hidden_size), jnp.float32, -bound1, bound1)
    w2 = jax.random.uniform(k3, (hidden_size, action_size), jnp.float32, -bound2, bound2)
    b2 = jax.random.uniform(k4, (1, action_size), jnp.float32, -bound2, bound2)
    return w1, b1, w2, b2


if __name__ == "__main__":
    # TODO(synk): `Policy.act` (Categorical sampling + log_prob) is host-side
    # control logic, not part of the forward pass, and is not implemented here.
    key = jax.random.PRNGKey(0)
    kx, kp = jax.random.split(key)

    batch = 256  # amortize per-call overhead; fills MXU M-tiles (256 on v6e/v7x)
    state = jax.random.normal(kx, (batch, S), dtype=jnp.float32)
    w1, b1, w2, b2 = init_params(kp)
    slab = pack_params(w1, b1, w2, b2)

    probs = policy_forward(state, slab)
    probs = jax.block_until_ready(probs)

    # Reference check against plain JAX
    h_ref = jnp.maximum(state @ w1 + b1, 0.0)
    logits_ref = h_ref @ w2 + b2
    probs_ref = jax.nn.softmax(logits_ref, axis=1)

    assert probs.shape == (batch, A)
    assert jnp.allclose(probs, probs_ref, atol=1e-3), "mismatch vs reference"
    assert jnp.allclose(jnp.sum(probs, axis=1), 1.0, atol=1e-3), "rows must sum to 1"

    # Also exercise the ragged-batch path (B not a multiple of the tile).
    probs_small = jax.block_until_ready(policy_forward(state[:2], slab))
    assert probs_small.shape == (2, A)
    assert jnp.allclose(probs_small, probs_ref[:2], atol=1e-3), "small-batch mismatch"

    print("KERNEL_OK")
</pallas_src>

<mosaic_0001>
module attributes {stable_mosaic.version = 11 : i64} {
  func.func @policy_kernel(%arg0: i32, %arg1: memref<256x8xf32, #tpu.memory_space<vmem>>, %arg2: memref<152x128xf32, #tpu.memory_space<vmem>>, %arg3: memref<256x128xf32, #tpu.memory_space<vmem>>) attributes {dimension_semantics = [#tpu.dimension_semantics<parallel>], iteration_bounds = array<i64: 1>, scalar_prefetch = 0 : i64, scratch_operands = 0 : i64, tpu.core_type = #tpu.core_type<tc>, window_params = [{transform_indices = @transform_0, window_bounds = array<i64: 256, 8>}, {pipeline_mode = #tpu.pipeline_mode<synchronous>, transform_indices = @transform_1, window_bounds = array<i64: 152, 128>}, {transform_indices = @transform_2, window_bounds = array<i64: 256, 128>}]} {
    %c0 = arith.constant 0 : index
    %c0_0 = arith.constant 0 : index
    %0 = vector.load %arg1[%c0, %c0_0] : memref<256x8xf32, #tpu.memory_space<vmem>>, vector<256x8xf32>
    %c0_1 = arith.constant 0 : index
    %c0_2 = arith.constant 0 : index
    %1 = vector.load %arg2[%c0_1, %c0_2] : memref<152x128xf32, #tpu.memory_space<vmem>>, vector<8x128xf32>
    %c8 = arith.constant 8 : index
    %c0_3 = arith.constant 0 : index
    %2 = vector.load %arg2[%c8, %c0_3] : memref<152x128xf32, #tpu.memory_space<vmem>>, vector<1x128xf32>
    %c16 = arith.constant 16 : index
    %c0_4 = arith.constant 0 : index
    %3 = vector.load %arg2[%c16, %c0_4] : memref<152x128xf32, #tpu.memory_space<vmem>>, vector<128x128xf32>
    %c144 = arith.constant 144 : index
    %c0_5 = arith.constant 0 : index
    %4 = vector.load %arg2[%c144, %c0_5] : memref<152x128xf32, #tpu.memory_space<vmem>>, vector<1x128xf32>
    %cst = arith.constant dense<0.000000e+00> : vector<256x128xf32>
    %5 = tpu.matmul %0, %1, %cst {dimension_numbers = #tpu.dot_dimension_numbers<[1], [0], [0], [1], [0, 0, 1, 1], [], []>} : vector<256x8xf32>, vector<8x128xf32>, vector<256x128xf32> -> vector<256x128xf32>
    %6 = vector.broadcast %2 : vector<1x128xf32> to vector<256x128xf32>
    %7 = arith.addf %5, %6 : vector<256x128xf32>
    %cst_6 = arith.constant 0.000000e+00 : f32
    %8 = vector.broadcast %cst_6 : f32 to vector<256x128xf32>
    %9 = arith.maximumf %7, %8 : vector<256x128xf32>
    %cst_7 = arith.constant dense<0.000000e+00> : vector<256x128xf32>
    %10 = tpu.matmul %9, %3, %cst_7 {dimension_numbers = #tpu.dot_dimension_numbers<[1], [0], [0], [1], [0, 0, 1, 1], [], []>} : vector<256x128xf32>, vector<128x128xf32>, vector<256x128xf32> -> vector<256x128xf32>
    %11 = vector.broadcast %4 : vector<1x128xf32> to vector<256x128xf32>
    %12 = arith.addf %10, %11 : vector<256x128xf32>
    %cst_8 = arith.constant dense<0xFF800000> : vector<256xf32>
    %13 = vector.multi_reduction <maximumf>, %12, %cst_8 [1] : vector<256x128xf32> to vector<256xf32>
    %14 = vector.shape_cast %13 : vector<256xf32> to vector<256x1xf32>
    %15 = vector.broadcast %14 : vector<256x1xf32> to vector<256x128xf32>
    %16 = arith.subf %12, %15 : vector<256x128xf32>
    %17 = math.exp %16 : vector<256x128xf32>
    %cst_9 = arith.constant dense<0.000000e+00> : vector<256xf32>
    %18 = vector.multi_reduction <add>, %17, %cst_9 [1] : vector<256x128xf32> to vector<256xf32>
    %19 = vector.shape_cast %18 : vector<256xf32> to vector<256x1xf32>
    %20 = tpu.reciprocal %19 {approx = true} : vector<256x1xf32> -> vector<256x1xf32>
    %21 = vector.broadcast %20 : vector<256x1xf32> to vector<256x128xf32>
    %22 = arith.mulf %17, %21 : vector<256x128xf32>
    %c0_10 = arith.constant 0 : index
    %c0_11 = arith.constant 0 : index
    %23 = vector.load %arg3[%c0_10, %c0_11] : memref<256x128xf32, #tpu.memory_space<vmem>>, vector<256x128xf32>
    tpu.vector_store %arg3[%c0_10, %c0_11], %22 {strides = array<i32>} : memref<256x128xf32, #tpu.memory_space<vmem>>, vector<256x128xf32>,
    return
  }
  func.func @transform_0(%arg0: i32) -> (i32, i32) {
    %c0_i32 = arith.constant 0 : i32
    %c0_i32_0 = arith.constant 0 : i32
    return %arg0, %c0_i32 : i32, i32
  }
  func.func @transform_1(%arg0: i32) -> (i32, i32) {
    %c0_i32 = arith.constant 0 : i32
    %c0_i32_0 = arith.constant 0 : i32
    %c0_i32_1 = arith.constant 0 : i32
    return %c0_i32, %c0_i32_0 : i32, i32
  }
  func.func @transform_2(%arg0: i32) -> (i32, i32) {
    %c0_i32 = arith.constant 0 : i32
    %c0_i32_0 = arith.constant 0 : i32
    return %arg0, %c0_i32 : i32, i32
  }
}

</mosaic_0001>

<bundles_post_ra>
// kernel: tpu_custom_call.1
= control target key start
LH: loop header
LB: loop body
LE: loop exit
PB: predicated region body
PF: predicated region fallthrough
CT: control target
= control target key end

     0   :  { %vm67_vm0 = vcmask 64512   ;;  %s1973_s0 = inlined_call_operand.vmem [shape: f32[256,8], index: 0, kind: input, shape index: {}]   ;;  %s1974_s1 = inlined_call_operand.vmem [shape: f32[152,128], index: 1, kind: input, shape index: {}]   ;;  %s1975_s2 = inlined_call_operand.hbm [shape: f32[256,128], index: 2, kind: output, shape index: {}]  }
   0x1   :  { %v44_v0 = vld [vmem:[%s1974_s1] sm:$0xff]  ;;  %v13_v2 = vld [vmem:[%s1973_s0 + $0x8] sm:$0xff]  ;;  %v14_v3 = vld [vmem:[%s1973_s0 + $0x10] sm:$0xff] }
   0x2   :  { %v12_v1 = vld [vmem:[%s1973_s0] sm:$0xff]  ;;  %1101 = vmatprep.subr.mxu0 %v44_v0  ;;  %v15_v4 = vld [vmem:[%s1973_s0 + $0x18] sm:$0xff]  ;;  %v17_v6 = vld [vmem:[%s1973_s0 + $0x28] sm:$0xff] }
   0x3   :  { %1103 = vmatprep.mubr.msk.f32.mxu0 %vm67_vm0, %v12_v1  ;;  %1102 = vmatpush3.msra.mxu0 %v44_v0  ;;  %v16_v5 = vld [vmem:[%s1973_s0 + $0x20] sm:$0xff]  ;;  %v18_v7 = vld [vmem:[%s1973_s0 + $0x30] sm:$0xff]  ;;  %v47_v9 = vld [vmem:[%s1974_s1 + $0x18] sm:$0xff] }
   0x4   :  { %1104 = vmatmul.mubr.msk.f32.vlgmr.msra.gmra.mrb[0].mxu0 %vm67_vm0, %v13_v2  ;;  %v46_v8 = vld [vmem:[%s1974_s1 + $0x10] sm:$0xff]  ;;  %v48_v10 = vld [vmem:[%s1974_s1 + $0x20] sm:$0xff]  ;;  %v19_v11 = vld [vmem:[%s1973_s0 + $0x38] sm:$0xff] }
   0x5   :  { %1106 = vmatprep.mubr.msk.f32.mxu0 %vm67_vm0, %v14_v3  ;;  %v1231_v12 = vpack.c.bf16 %v47_v9, %v46_v8  ;;  %v49_v13 = vld [vmem:[%s1974_s1 + $0x28] sm:$0xff]  ;;  %v20_v14 = vld [vmem:[%s1973_s0 + $0x40] sm:$0xff]  ;;  %v50_v16 = vld [vmem:[%s1974_s1 + $0x30] sm:$0xff] }
   0x6   :  { %v1235_v15 = vpack.c.bf16 %v49_v13, %v48_v10  ;;  %v51_v17 = vld [vmem:[%s1974_s1 + $0x38] sm:$0xff]  ;;  %v21_v18 = vld [vmem:[%s1973_s0 + $0x48] sm:$0xff] }
   0x7   :  { %1232 = vmatprep.subr.bf16.mxu0 %v1231_v12  ;;  %1263 = vmatprep.subr.bf16.mxu1 %v1231_v12 }
   0x8   :  { %1107 = vmatmul.mubr.msk.f32.gmra.mrb[2].mxu0 %vm67_vm0, %v15_v4  ;;  %1271 = vmatpush3.bf16.msra.mxu1 %v1231_v12 }
   0x9   :  { %1109 = vmatprep.mubr.msk.f32.mxu0 %vm67_vm0, %v16_v5  ;;  %1234 = vmatpush3.bf16.msra.mxu0 %v1231_v12 }
   0xc   :  { %1110 = vmatmul.mubr.msk.f32.gmra.mrb[4].mxu0 %vm67_vm0, %v17_v6 }
   0xd   :  { %1112 = vmatprep.mubr.msk.f32.mxu0 %vm67_vm0, %v18_v7 }
  0x10   :  { %1113 = vmatmul.mubr.msk.f32.gmra.mrb[6].mxu0 %vm67_vm0, %v19_v11 }
  0x11   :  { %1115 = vmatprep.mubr.msk.f32.mxu0 %vm67_vm0, %v20_v14 }
  0x12   :  { %7 = vsyncpa [#allocation3], 0  ;;  %v22_v19 = vld [vmem:[%s1973_s0 + $0x50] sm:$0xff]  ;;  %1236 = vmatprep.subr.bf16.mxu0 %v1235_v15  ;;  %v1239_v20 = vpack.c.bf16 %v51_v17, %v50_v16  ;;  %1264 = vmatprep.subr.bf16.mxu1 %v1235_v15  ;;  %v52_v21 = vld [vmem:[%s1974_s1 + $0x40] sm:$0xff] }
  0x13   :  { %v53_v22 = vld [vmem:[%s1974_s1 + $0x48] sm:$0xff]  ;;  %1272 = vmatpush3.bf16.msra.mxu1 %v1235_v15  ;;  %v23_v23 = vld [vmem:[%s1973_s0 + $0x58] sm:$0xff]  ;;  %1238 = vmatpush3.bf16.msra.mxu0 %v1235_v15  ;;  %v24_v24 = vld [vmem:[%s1973_s0 + $0x60] sm:$0xff] }
  0x14   :  { %1116 = vmatmul.mubr.msk.f32.gmra.mrb[8].mxu0 %vm67_vm0, %v21_v18  ;;  %1240 = vmatprep.subr.bf16.mxu0 %v1239_v20  ;;  %v1243_v25 = vpack.c.bf16 %v53_v22, %v52_v21  ;;  %v54_v26 = vld [vmem:[%s1974_s1 + $0x50] sm:$0xff]  ;;  %v55_v27 = vld [vmem:[%s1974_s1 + $0x58] sm:$0xff]  ;;  %v25_v28 = vld [vmem:[%s1973_s0 + $0x68] sm:$0xff] }
  0x15   :  { %1118 = vmatprep.mubr.msk.f32.mxu0 %vm67_vm0, %v22_v19  ;;  %1265 = vmatprep.subr.bf16.mxu1 %v1239_v20  ;;  %v26_v29 = vld [vmem:[%s1973_s0 + $0x70] sm:$0xff]  ;;  %v1247_v30 = vpack.c.bf16 %v55_v27, %v54_v26  ;;  %v56_v31 = vld [vmem:[%s1974_s1 + $0x60] sm:$0xff]  ;;  %v57_v32 = vld [vmem:[%s1974_s1 + $0x68] sm:$0xff] }
  0x16   :  { %v27_v33 = vld [vmem:[%s1973_s0 + $0x78] sm:$0xff]  ;;  %v28_v34 = vld [vmem:[%s1973_s0 + $0x80] sm:$0xff]  ;;  %v1251_v35 = vpack.c.bf16 %v57_v32, %v56_v31  ;;  %v58_v36 = vld [vmem:[%s1974_s1 + $0x70] sm:$0xff] }
  0x17   :  { %1273 = vmatpush3.bf16.msra.mxu1 %v1239_v20  ;;  %1242 = vmatpush3.bf16.msra.mxu0 %v1239_v20  ;;  %v59_v37 = vld [vmem:[%s1974_s1 + $0x78] sm:$0xff]  ;;  %v29_v38 = vld [vmem:[%s1973_s0 + $0x88] sm:$0xff]  ;;  %v30_v39 = vld [vmem:[%s1973_s0 + $0x90] sm:$0xff] }
  0x18   :  { %1119 = vmatmul.mubr.msk.f32.gmra.mrb[10].mxu0 %vm67_vm0, %v23_v23  ;;  %1244 = vmatprep.subr.bf16.mxu0 %v1243_v25  ;;  %v1255_v40 = vpack.c.bf16 %v59_v37, %v58_v36  ;;  %v60_v41 = vld [vmem:[%s1974_s1 + $0x80] sm:$0xff]  ;;  %v61_v42 = vld [vmem:[%s1974_s1 + $0x88] sm:$0xff]  ;;  %v31_v43 = vld [vmem:[%s1973_s0 + $0x98] sm:$0xff] }
  0x19   :  { %1121 = vmatprep.mubr.msk.f32.mxu0 %vm67_vm0, %v24_v24  ;;  %1266 = vmatprep.subr.bf16.mxu1 %v1243_v25  ;;  %v32_v44 = vld [vmem:[%s1973_s0 + $0xa0] sm:$0xff]  ;;  %v1259_v45 = vpack.c.bf16 %v61_v42, %v60_v41  ;;  %v33_v46 = vld [vmem:[%s1973_s0 + $0xa8] sm:$0xff]  ;;  %v34_v47 = vld [vmem:[%s1973_s0 + $0xb0] sm:$0xff] }
  0x1a   :  { %v35_v48 = vld [vmem:[%s1973_s0 + $0xb8] sm:$0xff]  ;;  %v36_v49 = vld [vmem:[%s1973_s0 + $0xc0] sm:$0xff]  ;;  %v37_v50 = vld [vmem:[%s1973_s0 + $0xc8] sm:$0xff] }
  0x1b   :  { %1274 = vmatpush3.bf16.msra.mxu1 %v1243_v25  ;;  %1246 = vmatpush3.bf16.msra.mxu0 %v1243_v25  ;;  %v38_v51 = vld [vmem:[%s1973_s0 + $0xd0] sm:$0xff]  ;;  %v39_v52 = vld [vmem:[%s1973_s0 + $0xd8] sm:$0xff]  ;;  %v40_v53 = vld [vmem:[%s1973_s0 + $0xe0] sm:$0xff] }
  0x1c   :  { %1122 = vmatmul.mubr.msk.f32.gmra.mrb[12].mxu0 %vm67_vm0, %v25_v28  ;;  %1248 = vmatprep.subr.bf16.mxu0 %v1247_v30  ;;  %v41_v54 = vld [vmem:[%s1973_s0 + $0xe8] sm:$0xff]  ;;  %v42_v55 = vld [vmem:[%s1973_s0 + $0xf0] sm:$0xff]  ;;  %v43_v56 = vld [vmem:[%s1973_s0 + $0xf8] sm:$0xff] }
  0x1d   :  { %1124 = vmatprep.mubr.msk.f32.mxu0 %vm67_vm0, %v26_v29  ;;  %1267 = vmatprep.subr.bf16.mxu1 %v1247_v30  ;;  %v1634_v57 = vld [vmem:[%s1974_s1 + $0x8] ss:$0 sm:$0xff] }
  0x1f   :  { %1275 = vmatpush3.bf16.msra.mxu1 %v1247_v30  ;;  %1250 = vmatpush3.bf16.msra.mxu0 %v1247_v30 }
  0x20   :  { %1125 = vmatmul.mubr.msk.f32.gmra.mrb[14].mxu0 %vm67_vm0, %v27_v33  ;;  %1252 = vmatprep.subr.bf16.mxu0 %v1251_v35 }
  0x21   :  { %1127 = vmatprep.mubr.msk.f32.mxu0 %vm67_vm0, %v28_v34  ;;  %1268 = vmatprep.subr.bf16.mxu1 %v1251_v35 }
  0x23   :  { %1276 = vmatpush3.bf16.msra.mxu1 %v1251_v35  ;;  %1254 = vmatpush3.bf16.msra.mxu0 %v1251_v35 }
  0x24   :  { %1128 = vmatmul.mubr.msk.f32.gmra.mrb[16].mxu0 %vm67_vm0, %v29_v38  ;;  %1256 = vmatprep.subr.bf16.mxu0 %v1255_v40 }
  0x25   :  { %1130 = vmatprep.mubr.msk.f32.mxu0 %vm67_vm0, %v30_v39  ;;  %1269 = vmatprep.subr.bf16.mxu1 %v1255_v40 }
  0x27   :  { %1277 = vmatpush3.bf16.msra.mxu1 %v1255_v40  ;;  %1258 = vmatpush3.bf16.msra.mxu0 %v1255_v40 }
  0x28   :  { %1131 = vmatmul.mubr.msk.f32.gmra.mrb[18].mxu0 %vm67_vm0, %v31_v43  ;;  %1260 = vmatprep.subr.bf16.mxu0 %v1259_v45 }
  0x29   :  { %1133 = vmatprep.mubr.msk.f32.mxu0 %vm67_vm0, %v32_v44  ;;  %1270 = vmatprep.subr.bf16.mxu1 %v1259_v45 }
  0x2b   :  { %1278 = vmatpush3.bf16.msra.mxu1 %v1259_v45  ;;  %1262 = vmatpush3.bf16.msra.mxu0 %v1259_v45 }
  0x2c   :  { %1134 = vmatmul.mubr.msk.f32.gmra.mrb[20].mxu0 %vm67_vm0, %v33_v46 }
  0x2d   :  { %1136 = vmatprep.mubr.msk.f32.mxu0 %vm67_vm0, %v34_v47 }
  0x30   :  { %1137 = vmatmul.mubr.msk.f32.gmra.mrb[22].mxu0 %vm67_vm0, %v35_v48 }
  0x31   :  { %1139 = vmatprep.mubr.msk.f32.mxu0 %vm67_vm0, %v36_v49 }
  0x34   :  { %1140 = vmatmul.mubr.msk.f32.gmra.mrb[24].mxu0 %vm67_vm0, %v37_v50 }
  0x35   :  { %1142 = vmatprep.mubr.msk.f32.mxu0 %vm67_vm0, %v38_v51 }
  0x38   :  { %1143 = vmatmul.mubr.msk.f32.gmra.mrb[26].mxu0 %vm67_vm0, %v39_v52 }
  0x39   :  { %1145 = vmatprep.mubr.msk.f32.mxu0 %vm67_vm0, %v40_v53 }
  0x3c   :  { %1146 = vmatmul.mubr.msk.f32.gmra.mrb[28].mxu0 %vm67_vm0, %v41_v54 }
  0x3d   :  { %1148 = vmatprep.mubr.msk.f32.mxu0 %vm67_vm0, %v42_v55 }
  0x40   :  { %1149 = vmatmul.mubr.msk.f32.gmra.mrb[30].mxu0 %vm67_vm0, %v43_v56 }
  0xd7   :  { %v1105_v58 = vpop.f32.mrb[0].mxu0 }
  0xd8   :  { %v236_v59 = vadd.f32 %v1105_v58, %v1634_v57  ;;  %v230_v60 = vpop.f32.mrb[1].mxu0 }
  0xd9   :  { %v231_v61 = vadd.f32 %v1634_v57, %v230_v60 }
  0xda   :  { %v390_v0 = vmax.f32 %v236_v59, 0.0 }
  0xdb   :  { %v389_v62 = vmax.f32 %v231_v61, 0.0  ;;  %v1108_v63 = vpop.f32.mrb[2].mxu0 }
  0xdc   :  { %v246_v1 = vadd.f32 %v1108_v63, %v1634_v57  ;;  %v240_v2 = vpop.f32.mrb[3].mxu0 }
  0xdd   :  { %v241_v3 = vadd.f32 %v1634_v57, %v240_v2  ;;  %1183 = vmatprep.mubr.f32.mxu0 %v389_v62 }
  0xde   :  { %1184 = vmatmul.mubr.f32.vlgmr.msra.gmra.mrb[32].mxu0 %v390_v0  ;;  %v392_v6 = vmax.f32 %v246_v1, 0.0 }
  0xdf   :  { %v391_v4 = vmax.f32 %v241_v3, 0.0  ;;  %v1111_v5 = vpop.f32.mrb[4].mxu0 }
  0xe0   :  { %v256_v7 = vadd.f32 %v1111_v5, %v1634_v57  ;;  %v250_v8 = vpop.f32.mrb[5].mxu0 }
  0xe1   :  { %v251_v9 = vadd.f32 %v1634_v57, %v250_v8  ;;  %1186 = vmatprep.mubr.f32.mxu0 %v391_v4 }
  0xe2   :  { %v394_v10 = vmax.f32 %v256_v7, 0.0  ;;  %1187 = vmatmul.mubr.f32.gmra.mrb[34].mxu0 %v392_v6 }
  0xe3   :  { %v393_v11 = vmax.f32 %v251_v9, 0.0  ;;  %v1114_v12 = vpop.f32.mrb[6].mxu0 }
  0xe4   :  { %v266_v13 = vadd.f32 %v1114_v12, %v1634_v57  ;;  %v260_v14 = vpop.f32.mrb[7].mxu0 }
  0xe5   :  { %1189 = vmatprep.mubr.f32.mxu0 %v393_v11  ;;  %v261_v15 = vadd.f32 %v1634_v57, %v260_v14 }
  0xe6   :  { %v396_v16 = vmax.f32 %v266_v13, 0.0  ;;  %1190 = vmatmul.mubr.f32.gmra.mrb[36].mxu0 %v394_v10 }
  0xe7   :  { %v1117_v17 = vpop.f32.mrb[8].mxu0  ;;  %v395_v18 = vmax.f32 %v261_v15, 0.0 }
  0xe8   :  { %v276_v19 = vadd.f32 %v1117_v17, %v1634_v57  ;;  %v270_v20 = vpop.f32.mrb[9].mxu0 }
  0xe9   :  { %v271_v21 = vadd.f32 %v1634_v57, %v270_v20  ;;  %1192 = vmatprep.mubr.f32.mxu1 %v395_v18 }
  0xea   :  { %v398_v22 = vmax.f32 %v276_v19, 0.0  ;;  %1193 = vmatmul.mubr.f32.vlgmr.msra.gmra.mrb[0].mxu1 %v396_v16 }
  0xeb   :  { %v397_v23 = vmax.f32 %v271_v21, 0.0  ;;  %v1120_v24 = vpop.f32.mrb[10].mxu0 }
  0xec   :  { %v286_v25 = vadd.f32 %v1120_v24, %v1634_v57  ;;  %v280_v26 = vpop.f32.mrb[11].mxu0 }
  0xed   :  { %v281_v27 = vadd.f32 %v1634_v57, %v280_v26  ;;  %1195 = vmatprep.mubr.f32.mxu1 %v397_v23 }
  0xee   :  { %v400_v28 = vmax.f32 %v286_v25, 0.0  ;;  %1196 = vmatmul.mubr.f32.gmra.mrb[2].mxu1 %v398_v22 }
  0xef   :  { %v399_v29 = vmax.f32 %v281_v27, 0.0  ;;  %v1123_v30 = vpop.f32.mrb[12].mxu0  ;;  %v1671_v27 = vld [vmem:[%s1974_s1 + $0x90] ss:$0 sm:$0xff]  ;;  %s1434_s1 = smov [#allocation2]  }
  0xf0   :  { %v296_v31 = vadd.f32 %v1123_v30, %v1634_v57  ;;  %v290_v32 = vpop.f32.mrb[13].mxu0  ;;  %s975_s26 = sshll.u32 %s1434_s1, 4  ;;  %s976_s26 = int_to_ptr.vmem [resolvable:$true] %s975_s26 }
  0xf1   :  { %v291_v33 = vadd.f32 %v1634_v57, %v290_v32  ;;  %1198 = vmatprep.mubr.f32.mxu1 %v399_v29  ;;  %s1410_s27 = scalar_lea.vmem %s976_s26, 4096  ;;  %p1415_p1 = scmp.lt.s32.totalorder %s976_s26, %s976_s26 }
  0xf2   :  { %v402_v34 = vmax.f32 %v296_v31, 0.0  ;;  %1199 = vmatmul.mubr.f32.gmra.mrb[4].mxu1 %v400_v28  ;;  %p1411_p0 = scmp.ne.s32.totalorder %s976_s26, %s1410_s27  ;;  %p1416_p2 = scmp.lt.s32.totalorder %s1410_s27, %s1410_s27 }
  0xf3   :  { %v401_v35 = vmax.f32 %v291_v33, 0.0  ;;  %v1126_v36 = vpop.f32.mrb[14].mxu0 }
  0xf4   :  { %v306_v37 = vadd.f32 %v1126_v36, %v1634_v57  ;;  %v300_v38 = vpop.f32.mrb[15].mxu0  ;;  %p1417_p3 = por %p1416_p2, %p1415_p1 }
  0xf5   :  { %v301_v39 = vadd.f32 %v1634_v57, %v300_v38  ;;  %1201 = vmatprep.mubr.f32.mxu1 %v401_v35 }
  0xf6   :  { %v404_v40 = vmax.f32 %v306_v37, 0.0  ;;  %1202 = vmatmul.mubr.f32.gmra.mrb[6].mxu1 %v402_v34  ;;  %p1418_p4 = pnand %p1417_p3, %p1411_p0 }
  0xf7   :  { %v403_v41 = vmax.f32 %v301_v39, 0.0  ;;  %v1129_v42 = vpop.f32.mrb[16].mxu0 }
  0xf8   :  { %v316_v43 = vadd.f32 %v1129_v42, %v1634_v57  ;;  %v310_v44 = vpop.f32.mrb[17].mxu0 }
  0xf9   :  { %v311_v45 = vadd.f32 %v1634_v57, %v310_v44  ;;  %1204 = vmatprep.mubr.f32.mxu1 %v403_v41 }
  0xfa   :  { %v406_v46 = vmax.f32 %v316_v43, 0.0  ;;  %1205 = vmatmul.mubr.f32.gmra.mrb[8].mxu1 %v404_v40 }
  0xfb   :  { %v405_v47 = vmax.f32 %v311_v45, 0.0  ;;  %v1132_v48 = vpop.f32.mrb[18].mxu0 }
  0xfc   :  { %v326_v49 = vadd.f32 %v1132_v48, %v1634_v57  ;;  %v320_v50 = vpop.f32.mrb[19].mxu0 }
  0xfd   :  { %v321_v51 = vadd.f32 %v1634_v57, %v320_v50  ;;  %1207 = vmatprep.mubr.f32.mxu1 %v405_v47 }
  0xfe   :  { %v408_v52 = vmax.f32 %v326_v49, 0.0  ;;  %1208 = vmatmul.mubr.f32.gmra.mrb[10].mxu1 %v406_v46 }
  0xff   :  { %v407_v53 = vmax.f32 %v321_v51, 0.0  ;;  %v1135_v54 = vpop.f32.mrb[20].mxu0 }
 0x100   :  { %v336_v55 = vadd.f32 %v1135_v54, %v1634_v57  ;;  %v330_v56 = vpop.f32.mrb[21].mxu0 }
 0x101   :  { %v331_v58 = vadd.f32 %v1634_v57, %v330_v56  ;;  %1210 = vmatprep.mubr.f32.mxu1 %v407_v53 }
 0x102   :  { %v410_v59 = vmax.f32 %v336_v55, 0.0  ;;  %1211 = vmatmul.mubr.f32.gmra.mrb[12].mxu1 %v408_v52 }
 0x103   :  { %v409_v60 = vmax.f32 %v331_v58, 0.0  ;;  %v1138_v61 = vpop.f32.mrb[22].mxu0 }
 0x104   :  { %v346_v62 = vadd.f32 %v1138_v61, %v1634_v57  ;;  %v340_v63 = vpop.f32.mrb[23].mxu0 }
 0x105   :  { %v341_v0 = vadd.f32 %v1634_v57, %v340_v63  ;;  %1213 = vmatprep.mubr.f32.mxu1 %v409_v60 }
 0x106   :  { %v412_v1 = vmax.f32 %v346_v62, 0.0  ;;  %1214 = vmatmul.mubr.f32.gmra.mrb[14].mxu1 %v410_v59 }
 0x107   :  { %v411_v2 = vmax.f32 %v341_v0, 0.0  ;;  %v1141_v3 = vpop.f32.mrb[24].mxu0 }
 0x108   :  { %v356_v4 = vadd.f32 %v1141_v3, %v1634_v57  ;;  %v350_v5 = vpop.f32.mrb[25].mxu0 }
 0x109   :  { %v351_v6 = vadd.f32 %v1634_v57, %v350_v5  ;;  %1216 = vmatprep.mubr.f32.mxu1 %v411_v2 }
 0x10a   :  { %v414_v7 = vmax.f32 %v356_v4, 0.0  ;;  %1217 = vmatmul.mubr.f32.gmra.mrb[16].mxu1 %v412_v1 }
 0x10b   :  { %v413_v8 = vmax.f32 %v351_v6, 0.0  ;;  %v1144_v9 = vpop.f32.mrb[26].mxu0 }
 0x10c   :  { %v366_v10 = vadd.f32 %v1144_v9, %v1634_v57  ;;  %v360_v11 = vpop.f32.mrb[27].mxu0 }
 0x10d   :  { %v361_v12 = vadd.f32 %v1634_v57, %v360_v11  ;;  %1219 = vmatprep.mubr.f32.mxu1 %v413_v8 }
 0x10e   :  { %v416_v13 = vmax.f32 %v366_v10, 0.0  ;;  %1220 = vmatmul.mubr.f32.gmra.mrb[18].mxu1 %v414_v7 }
 0x10f   :  { %v415_v14 = vmax.f32 %v361_v12, 0.0  ;;  %v1147_v15 = vpop.f32.mrb[28].mxu0 }
 0x110   :  { %v376_v16 = vadd.f32 %v1147_v15, %v1634_v57  ;;  %v370_v17 = vpop.f32.mrb[29].mxu0 }
 0x111   :  { %v371_v18 = vadd.f32 %v1634_v57, %v370_v17  ;;  %1222 = vmatprep.mubr.f32.mxu1 %v415_v14 }
 0x112   :  { %v418_v19 = vmax.f32 %v376_v16, 0.0  ;;  %1223 = vmatmul.mubr.f32.gmra.mrb[20].mxu1 %v416_v13 }
 0x113   :  { %v417_v20 = vmax.f32 %v371_v18, 0.0  ;;  %v1150_v21 = vpop.f32.mrb[30].mxu0 }
 0x114   :  { %v386_v22 = vadd.f32 %v1150_v21, %v1634_v57  ;;  %v380_v23 = vpop.f32.mrb[31].mxu0 }
 0x115   :  { %v381_v24 = vadd.f32 %v1634_v57, %v380_v23  ;;  %1225 = vmatprep.mubr.f32.mxu1 %v417_v20 }
 0x116   :  { %v420_v25 = vmax.f32 %v386_v22, 0.0  ;;  %1226 = vmatmul.mubr.f32.gmra.mrb[22].mxu1 %v418_v19 }
 0x117   :  { %v419_v26 = vmax.f32 %v381_v24, 0.0 }
 0x119   :  { %1228 = vmatprep.mubr.f32.mxu1 %v419_v26 }
 0x11a   :  { %1229 = vmatmul.mubr.f32.gmra.mrb[24].mxu1 %v420_v25 }
 0x1b1   :  { %v1185_v28 = vpop.f32.mrb[32].mxu0 }
 0x1b2   :  { %v1674_v29 = vadd.f32 %v1185_v28, %v1671_v27  ;;  %v491_v30 = vpop.f32.mrb[33].mxu0 }
 0x1b3   :  { %v1678_v57 = vadd.f32 %v1671_v27, %v491_v30 }
 0x1b4   :  { %652 = vmax.xlane.f32.xlu0 %v1674_v29 }
 0x1b5   :  { %v1188_v31 = vpop.f32.mrb[34].mxu0 }
 0x1b6   :  { %v1681_v32 = vadd.f32 %v1188_v31, %v1671_v27  ;;  %v501_v33 = vpop.f32.mrb[35].mxu0 }
 0x1b7   :  { %v1686_v35 = vadd.f32 %v1671_v27, %v501_v33 }
 0x1b8   :  { %656 = vmax.xlane.f32.xlu1 %v1681_v32  ;;  %650 = vmax.xlane.f32.xlu0 %v1678_v57 }
 0x1b9   :  { %v1191_v34 = vpop.f32.mrb[36].mxu0 }
 0x1ba   :  { %v511_v36 = vpop.f32.mrb[37].mxu0  ;;  %v1694_v39 = vadd.f32 %v1191_v34, %v1671_v27 }
 0x1bb   :  { %v1689_v37 = vadd.f32 %v1671_v27, %v511_v36 }
 0x1bc   :  { %654 = vmax.xlane.f32.xlu1 %v1686_v35 }
 0x1bd   :  { %v1194_v38 = vpop.f32.mrb[0].mxu1  ;;  %658 = vmax.xlane.f32.xlu0 %v1689_v37 }
 0x1be   :  { %v521_v40 = vpop.f32.mrb[1].mxu1  ;;  %v1702_v43 = vadd.f32 %v1194_v38, %v1671_v27 }
 0x1bf   :  { %v1697_v41 = vadd.f32 %v1671_v27, %v521_v40 }
 0x1c0   :  { %660 = vmax.xlane.f32.xlu1 %v1694_v39 }
 0x1c1   :  { %v1197_v42 = vpop.f32.mrb[2].mxu1  ;;  %662 = vmax.xlane.f32.xlu0 %v1697_v41 }
 0x1c2   :  { %v531_v44 = vpop.f32.mrb[3].mxu1  ;;  %v1710_v47 = vadd.f32 %v1197_v42, %v1671_v27 }
 0x1c3   :  { %v1705_v45 = vadd.f32 %v1671_v27, %v531_v44 }
 0x1c4   :  { %664 = vmax.xlane.f32.xlu1 %v1702_v43 }
 0x1c5   :  { %v1200_v46 = vpop.f32.mrb[4].mxu1  ;;  %666 = vmax.xlane.f32.xlu0 %v1705_v45 }
 0x1c6   :  { %v541_v48 = vpop.f32.mrb[5].mxu1  ;;  %v1718_v51 = vadd.f32 %v1200_v46, %v1671_v27 }
 0x1c7   :  { %v1713_v49 = vadd.f32 %v1671_v27, %v541_v48 }
 0x1c8   :  { %668 = vmax.xlane.f32.xlu1 %v1710_v47 }
 0x1c9   :  { %v1203_v50 = vpop.f32.mrb[6].mxu1  ;;  %670 = vmax.xlane.f32.xlu0 %v1713_v49 }
 0x1ca   :  { %v551_v52 = vpop.f32.mrb[7].mxu1  ;;  %v1726_v55 = vadd.f32 %v1203_v50, %v1671_v27 }
 0x1cb   :  { %v1721_v53 = vadd.f32 %v1671_v27, %v551_v52 }
 0x1cc   :  { %672 = vmax.xlane.f32.xlu1 %v1718_v51 }
 0x1cd   :  { %v1206_v54 = vpop.f32.mrb[8].mxu1  ;;  %674 = vmax.xlane.f32.xlu0 %v1721_v53 }
 0x1ce   :  { %v561_v56 = vpop.f32.mrb[9].mxu1  ;;  %v1734_v60 = vadd.f32 %v1206_v54, %v1671_v27 }
 0x1cf   :  { %v1729_v58 = vadd.f32 %v1671_v27, %v561_v56 }
 0x1d0   :  { %676 = vmax.xlane.f32.xlu1 %v1726_v55 }
 0x1d1   :  { %v1209_v59 = vpop.f32.mrb[10].mxu1  ;;  %678 = vmax.xlane.f32.xlu0 %v1729_v58 }
 0x1d2   :  { %v571_v61 = vpop.f32.mrb[11].mxu1  ;;  %v1742_v0 = vadd.f32 %v1209_v59, %v1671_v27 }
 0x1d3   :  { %v1737_v62 = vadd.f32 %v1671_v27, %v571_v61 }
 0x1d4   :  { %680 = vmax.xlane.f32.xlu1 %v1734_v60 }
 0x1d5   :  { %v1212_v63 = vpop.f32.mrb[12].mxu1  ;;  %682 = vmax.xlane.f32.xlu0 %v1737_v62 }
 0x1d6   :  { %v581_v1 = vpop.f32.mrb[13].mxu1  ;;  %v1750_v4 = vadd.f32 %v1212_v63, %v1671_v27 }
 0x1d7   :  { %v1745_v2 = vadd.f32 %v1671_v27, %v581_v1 }
 0x1d8   :  { %684 = vmax.xlane.f32.xlu1 %v1742_v0 }
 0x1d9   :  { %v1215_v3 = vpop.f32.mrb[14].mxu1  ;;  %686 = vmax.xlane.f32.xlu0 %v1745_v2 }
 0x1da   :  { %v591_v5 = vpop.f32.mrb[15].mxu1  ;;  %v1758_v8 = vadd.f32 %v1215_v3, %v1671_v27 }
 0x1db   :  { %v1753_v6 = vadd.f32 %v1671_v27, %v591_v5 }
 0x1dc   :  { %688 = vmax.xlane.f32.xlu1 %v1750_v4 }
 0x1dd   :  { %v1218_v7 = vpop.f32.mrb[16].mxu1  ;;  %690 = vmax.xlane.f32.xlu0 %v1753_v6 }
 0x1de   :  { %v601_v9 = vpop.f32.mrb[17].mxu1  ;;  %v1766_v12 = vadd.f32 %v1218_v7, %v1671_v27 }
 0x1df   :  { %v1761_v10 = vadd.f32 %v1671_v27, %v601_v9 }
 0x1e0   :  { %692 = vmax.xlane.f32.xlu1 %v1758_v8 }
 0x1e1   :  { %v1221_v11 = vpop.f32.mrb[18].mxu1  ;;  %694 = vmax.xlane.f32.xlu0 %v1761_v10 }
 0x1e2   :  { %v611_v13 = vpop.f32.mrb[19].mxu1  ;;  %v1774_v16 = vadd.f32 %v1221_v11, %v1671_v27 }
 0x1e3   :  { %v1769_v14 = vadd.f32 %v1671_v27, %v611_v13 }
 0x1e4   :  { %696 = vmax.xlane.f32.xlu1 %v1766_v12 }
 0x1e5   :  { %v1224_v15 = vpop.f32.mrb[20].mxu1  ;;  %698 = vmax.xlane.f32.xlu0 %v1769_v14 }
 0x1e6   :  { %v621_v17 = vpop.f32.mrb[21].mxu1  ;;  %v1782_v20 = vadd.f32 %v1224_v15, %v1671_v27 }
 0x1e7   :  { %v1777_v18 = vadd.f32 %v1671_v27, %v621_v17 }
 0x1e8   :  { %700 = vmax.xlane.f32.xlu1 %v1774_v16 }
 0x1e9   :  { %v1227_v19 = vpop.f32.mrb[22].mxu1  ;;  %702 = vmax.xlane.f32.xlu0 %v1777_v18 }
 0x1ea   :  { %v631_v21 = vpop.f32.mrb[23].mxu1  ;;  %v1790_v24 = vadd.f32 %v1227_v19, %v1671_v27 }
 0x1eb   :  { %v1785_v22 = vadd.f32 %v1671_v27, %v631_v21 }
 0x1ec   :  { %704 = vmax.xlane.f32.xlu1 %v1782_v20 }
 0x1ed   :  { %v1230_v23 = vpop.f32.mrb[24].mxu1  ;;  %706 = vmax.xlane.f32.xlu0 %v1785_v22 }
 0x1ee   :  { %v1793_v25 = vadd.f32 %v1230_v23, %v1671_v27  ;;  %v641_v26 = vpop.f32.mrb[25].mxu1 }
 0x1ef   :  { %v1796_v28 = vadd.f32 %v1671_v27, %v641_v26 }
 0x1f0   :  { %708 = vmax.xlane.f32.xlu1 %v1790_v24 }
 0x1f1   :  { %710 = vmax.xlane.f32.xlu0 %v1796_v28 }
 0x1f4   :  { %712 = vmax.xlane.f32.xlu1 %v1793_v25 }
 0x241   :  { %v653_v30 = vpop.xlane.xlu0 %652 }
 0x242   :  { %v715_v31 = vsub.f32 %v1674_v29, %v653_v30 }
 0x244   :  { %v748_v33 = vmul.f32 1.442695, %v715_v31 }
 0x245   :  { %v657_v34 = vpop.xlane.xlu1 %656  ;;  %v651_v36 = vpop.xlane.xlu0 %650 }
 0x246   :  { %1282 = vpow2.f32 %v748_v33  ;;  %v717_v38 = vsub.f32 %v1681_v32, %v657_v34  ;;  %v714_v40 = vsub.f32 %v1678_v57, %v651_v36 }
 0x248   :  { %v752_v42 = vmul.f32 1.442695, %v717_v38  ;;  %v746_v27 = vmul.f32 1.442695, %v714_v40 }
 0x249   :  { %v655_v44 = vpop.xlane.xlu1 %654 }
 0x24a   :  { %1284 = vpow2.f32 %v752_v42  ;;  %v716_v46 = vsub.f32 %v1686_v35, %v655_v44  ;;  %v659_v48 = vpop.xlane.xlu0 %658 }
 0x24b   :  { %1286 = vpow2.f32 %v746_v27  ;;  %v718_v50 = vsub.f32 %v1689_v37, %v659_v48 }
 0x24c   :  { %v750_v52 = vmul.f32 1.442695, %v716_v46 }
 0x24d   :  { %v661_v29 = vpop.xlane.xlu1 %660  ;;  %v754_v59 = vmul.f32 1.442695, %v718_v50 }
 0x24e   :  { %1288 = vpow2.f32 %v750_v52  ;;  %v719_v54 = vsub.f32 %v1694_v39, %v661_v29  ;;  %v663_v56 = vpop.xlane.xlu0 %662 }
 0x24f   :  { %v720_v32 = vsub.f32 %v1697_v41, %v663_v56 }
 0x250   :  { %v1808_v57 = vpop.eup %1282  ;;  %v756_v61 = vmul.f32 1.442695, %v719_v54 }
 0x251   :  { %812 = vadd.xlane.f32.xlu1 %v1808_v57  ;;  %v665_v63 = vpop.xlane.xlu1 %664  ;;  %v758_v37 = vmul.f32 1.442695, %v720_v32 }
 0x252   :  { %1290 = vpow2.f32 %v756_v61  ;;  %v721_v35 = vsub.f32 %v1702_v43, %v665_v63  ;;  %v667_v1 = vpop.xlane.xlu0 %666 }
 0x253   :  { %1292 = vpow2.f32 %v754_v59  ;;  %v722_v3 = vsub.f32 %v1705_v45, %v667_v1 }
 0x254   :  { %v1813_v5 = vpop.eup %1284  ;;  %v760_v39 = vmul.f32 1.442695, %v721_v35 }
 0x255   :  { %v1815_v7 = vpop.eup %1286  ;;  %816 = vadd.xlane.f32.xlu1 %v1813_v5  ;;  %v669_v41 = vpop.xlane.xlu1 %668  ;;  %v762_v43 = vmul.f32 1.442695, %v722_v3 }
 0x256   :  { %1294 = vpow2.f32 %v760_v39  ;;  %v723_v9 = vsub.f32 %v1710_v47, %v669_v41  ;;  %810 = vadd.xlane.f32.xlu0 %v1815_v7  ;;  %v671_v11 = vpop.xlane.xlu0 %670 }
 0x257   :  { %1296 = vpow2.f32 %v758_v37  ;;  %v724_v13 = vsub.f32 %v1713_v49, %v671_v11 }
 0x258   :  { %v1821_v15 = vpop.eup %1288  ;;  %v764_v45 = vmul.f32 1.442695, %v723_v9 }
 0x259   :  { %v673_v17 = vpop.xlane.xlu1 %672  ;;  %v766_v23 = vmul.f32 1.442695, %v724_v13 }
 0x25a   :  { %1298 = vpow2.f32 %v764_v45  ;;  %v725_v19 = vsub.f32 %v1718_v51, %v673_v17  ;;  %814 = vadd.xlane.f32.xlu0 %v1821_v15  ;;  %v675_v21 = vpop.xlane.xlu0 %674 }
 0x25b   :  { %1300 = vpow2.f32 %v762_v43  ;;  %v726_v47 = vsub.f32 %v1721_v53, %v675_v21 }
 0x25c   :  { %v1826_v26 = vpop.eup %1290  ;;  %v768_v30 = vmul.f32 1.442695, %v725_v19 }
 0x25d   :  { %v1828_v31 = vpop.eup %1292  ;;  %820 = vadd.xlane.f32.xlu1 %v1826_v26  ;;  %v677_v49 = vpop.xlane.xlu1 %676  ;;  %v770_v34 = vmul.f32 1.442695, %v726_v47 }
 0x25e   :  { %1302 = vpow2.f32 %v768_v30  ;;  %v727_v33 = vsub.f32 %v1726_v55, %v677_v49  ;;  %818 = vadd.xlane.f32.xlu0 %v1828_v31  ;;  %v679_v51 = vpop.xlane.xlu0 %678 }
 0x25f   :  { %1304 = vpow2.f32 %v766_v23  ;;  %v728_v36 = vsub.f32 %v1729_v58, %v679_v51 }
 0x260   :  { %v1834_v38 = vpop.eup %1294  ;;  %v772_v53 = vmul.f32 1.442695, %v727_v33 }
 0x261   :  { %v1836_v40 = vpop.eup %1296  ;;  %824 = vadd.xlane.f32.xlu1 %v1834_v38  ;;  %v681_v42 = vpop.xlane.xlu1 %680  ;;  %v774_v44 = vmul.f32 1.442695, %v728_v36 }
 0x262   :  { %1306 = vpow2.f32 %v772_v53  ;;  %v729_v27 = vsub.f32 %v1734_v60, %v681_v42  ;;  %822 = vadd.xlane.f32.xlu0 %v1836_v40  ;;  %v683_v55 = vpop.xlane.xlu0 %682 }
 0x263   :  { %1308 = vpow2.f32 %v770_v34  ;;  %v730_v46 = vsub.f32 %v1737_v62, %v683_v55 }
 0x264   :  { %v1842_v48 = vpop.eup %1298  ;;  %v776_v58 = vmul.f32 1.442695, %v729_v27 }
 0x265   :  { %v1844_v50 = vpop.eup %1300  ;;  %828 = vadd.xlane.f32.xlu1 %v1842_v48  ;;  %v685_v52 = vpop.xlane.xlu1 %684  ;;  %v778_v54 = vmul.f32 1.442695, %v730_v46 }
 0x266   :  { %1310 = vpow2.f32 %v776_v58  ;;  %v731_v29 = vsub.f32 %v1742_v0, %v685_v52  ;;  %826 = vadd.xlane.f32.xlu0 %v1844_v50  ;;  %v687_v60 = vpop.xlane.xlu0 %686 }
 0x267   :  { %1312 = vpow2.f32 %v774_v44  ;;  %v732_v56 = vsub.f32 %v1745_v2, %v687_v60 }
 0x268   :  { %v1850_v59 = vpop.eup %1302  ;;  %v780_v62 = vmul.f32 1.442695, %v731_v29 }
 0x269   :  { %v1852_v32 = vpop.eup %1304  ;;  %832 = vadd.xlane.f32.xlu1 %v1850_v59  ;;  %v689_v61 = vpop.xlane.xlu1 %688  ;;  %v782_v35 = vmul.f32 1.442695, %v732_v56 }
 0x26a   :  { %1314 = vpow2.f32 %v780_v62  ;;  %v733_v63 = vsub.f32 %v1750_v4, %v689_v61  ;;  %830 = vadd.xlane.f32.xlu0 %v1852_v32  ;;  %v691_v0 = vpop.xlane.xlu0 %690 }
 0x26b   :  { %1316 = vpow2.f32 %v778_v54  ;;  %v734_v1 = vsub.f32 %v1753_v6, %v691_v0 }
 0x26c   :  { %v1858_v37 = vpop.eup %1306  ;;  %v784_v2 = vmul.f32 1.442695, %v733_v63 }
 0x26d   :  { %v1860_v3 = vpop.eup %1308  ;;  %836 = vadd.xlane.f32.xlu1 %v1858_v37  ;;  %v693_v39 = vpop.xlane.xlu1 %692  ;;  %v786_v9 = vmul.f32 1.442695, %v734_v1 }
 0x26e   :  { %1318 = vpow2.f32 %v784_v2  ;;  %v735_v41 = vsub.f32 %v1758_v8, %v693_v39  ;;  %834 = vadd.xlane.f32.xlu0 %v1860_v3  ;;  %v695_v4 = vpop.xlane.xlu0 %694 }
 0x26f   :  { %1320 = vpow2.f32 %v782_v35  ;;  %v736_v11 = vsub.f32 %v1761_v10, %v695_v4 }
 0x270   :  { %v1866_v43 = vpop.eup %1310  ;;  %v788_v6 = vmul.f32 1.442695, %v735_v41 }
 0x271   :  { %v1868_v13 = vpop.eup %1312  ;;  %840 = vadd.xlane.f32.xlu1 %v1866_v43  ;;  %v697_v45 = vpop.xlane.xlu1 %696  ;;  %v790_v19 = vmul.f32 1.442695, %v736_v11 }
 0x272   :  { %1322 = vpow2.f32 %v788_v6  ;;  %v737_v17 = vsub.f32 %v1766_v12, %v697_v45  ;;  %838 = vadd.xlane.f32.xlu0 %v1868_v13  ;;  %v699_v8 = vpop.xlane.xlu0 %698 }
 0x273   :  { %1324 = vpow2.f32 %v786_v9  ;;  %v738_v21 = vsub.f32 %v1769_v14, %v699_v8 }
 0x274   :  { %v1874_v23 = vpop.eup %1314  ;;  %v792_v10 = vmul.f32 1.442695, %v737_v17 }
 0x275   :  { %v1876_v47 = vpop.eup %1316  ;;  %844 = vadd.xlane.f32.xlu1 %v1874_v23  ;;  %v701_v30 = vpop.xlane.xlu1 %700  ;;  %v794_v33 = vmul.f32 1.442695, %v738_v21 }
 0x276   :  { %1326 = vpow2.f32 %v792_v10  ;;  %v739_v49 = vsub.f32 %v1774_v16, %v701_v30  ;;  %842 = vadd.xlane.f32.xlu0 %v1876_v47  ;;  %v703_v12 = vpop.xlane.xlu0 %702 }
 0x277   :  { %1328 = vpow2.f32 %v790_v19  ;;  %v740_v51 = vsub.f32 %v1777_v18, %v703_v12 }
 0x278   :  { %v1882_v34 = vpop.eup %1318  ;;  %v796_v14 = vmul.f32 1.442695, %v739_v49 }
 0x279   :  { %v1884_v36 = vpop.eup %1320  ;;  %848 = vadd.xlane.f32.xlu1 %v1882_v34  ;;  %v705_v53 = vpop.xlane.xlu1 %704  ;;  %v798_v27 = vmul.f32 1.442695, %v740_v51 }
 0x27a   :  { %1330 = vpow2.f32 %v796_v14  ;;  %v741_v42 = vsub.f32 %v1782_v20, %v705_v53  ;;  %846 = vadd.xlane.f32.xlu0 %v1884_v36  ;;  %v707_v16 = vpop.xlane.xlu0 %706 }
 0x27b   :  { %1332 = vpow2.f32 %v794_v33  ;;  %v742_v55 = vsub.f32 %v1785_v22, %v707_v16 }
 0x27c   :  { %v1890_v44 = vpop.eup %1322  ;;  %v800_v18 = vmul.f32 1.442695, %v741_v42 }
 0x27d   :  { %v1892_v46 = vpop.eup %1324  ;;  %852 = vadd.xlane.f32.xlu1 %v1890_v44  ;;  %v709_v58 = vpop.xlane.xlu1 %708  ;;  %v802_v29 = vmul.f32 1.442695, %v742_v55 }
 0x27e   :  { %1334 = vpow2.f32 %v800_v18  ;;  %v743_v52 = vsub.f32 %v1790_v24, %v709_v58  ;;  %850 = vadd.xlane.f32.xlu0 %v1892_v46  ;;  %v711_v20 = vpop.xlane.xlu0 %710 }
 0x27f   :  { %1336 = vpow2.f32 %v798_v27  ;;  %v744_v60 = vsub.f32 %v1796_v28, %v711_v20 }
 0x280   :  { %v1898_v54 = vpop.eup %1326  ;;  %v804_v22 = vmul.f32 1.442695, %v743_v52 }
 0x281   :  { %v1900_v56 = vpop.eup %1328  ;;  %856 = vadd.xlane.f32.xlu1 %v1898_v54  ;;  %v713_v62 = vpop.xlane.xlu1 %712  ;;  %v806_v24 = vmul.f32 1.442695, %v744_v60 }
 0x282   :  { %1338 = vpow2.f32 %v804_v22  ;;  %v745_v61 = vsub.f32 %v1793_v25, %v713_v62  ;;  %854 = vadd.xlane.f32.xlu0 %v1900_v56 }
 0x283   :  { %1340 = vpow2.f32 %v802_v29 }
 0x284   :  { %v1905_v63 = vpop.eup %1330  ;;  %v808_v0 = vmul.f32 1.442695, %v745_v61 }
 0x285   :  { %v1907_v35 = vpop.eup %1332  ;;  %860 = vadd.xlane.f32.xlu1 %v1905_v63 }
 0x286   :  { %1342 = vpow2.f32 %v808_v0  ;;  %858 = vadd.xlane.f32.xlu0 %v1907_v35 }
 0x287   :  { %1344 = vpow2.f32 %v806_v24 }
 0x288   :  { %v1911_v28 = vpop.eup %1334 }
 0x289   :  { %v1913_v1 = vpop.eup %1336  ;;  %864 = vadd.xlane.f32.xlu1 %v1911_v28 }
 0x28a   :  { %862 = vadd.xlane.f32.xlu0 %v1913_v1 }
 0x28c   :  { %v1917_v25 = vpop.eup %1338 }
 0x28d   :  { %v1919_v2 = vpop.eup %1340  ;;  %868 = vadd.xlane.f32.xlu1 %v1917_v25 }
 0x28e   :  { %866 = vadd.xlane.f32.xlu0 %v1919_v2 }
 0x290   :  { %v1923_v39 = vpop.eup %1342 }
 0x291   :  { %v1925_v41 = vpop.eup %1344  ;;  %872 = vadd.xlane.f32.xlu1 %v1923_v39 }
 0x292   :  { %870 = vadd.xlane.f32.xlu0 %v1925_v41 }
 0x2de   :  { %v813_v4 = vpop.xlane.xlu1 %812 }
 0x2df   :  { %1346 = vrcp.f32 %v813_v4 }
 0x2e2   :  { %v817_v9 = vpop.xlane.xlu1 %816 }
 0x2e3   :  { %1348 = vrcp.f32 %v817_v9  ;;  %v811_v11 = vpop.xlane.xlu0 %810 }
 0x2e4   :  { %1350 = vrcp.f32 %v811_v11 }
 0x2e7   :  { %v815_v6 = vpop.xlane.xlu0 %814 }
 0x2e8   :  { %1352 = vrcp.f32 %v815_v6 }
 0x2e9   :  { %v1347_v45 = vpop.eup %1346 }
 0x2ea   :  { %v907_v17 = vmul.f32 %v1347_v45, %v1808_v57  ;;  %v821_v8 = vpop.xlane.xlu1 %820 }
 0x2eb   :  { %1354 = vrcp.f32 %v821_v8  ;;  %v819_v19 = vpop.xlane.xlu0 %818 }
 0x2ec   :  { %939 = vst [vmem:[#allocation2 + $0x8] sm:$0xff] %v907_v17  ;;  %1356 = vrcp.f32 %v819_v19 }
 0x2ed   :  { %v1349_v21 = vpop.eup %1348 }
 0x2ee   :  { %v1351_v10 = vpop.eup %1350  ;;  %v909_v30 = vmul.f32 %v1349_v21, %v1813_v5  ;;  %v825_v49 = vpop.xlane.xlu1 %824 }
 0x2ef   :  { %v906_v12 = vmul.f32 %v1351_v10, %v1815_v7  ;;  %1358 = vrcp.f32 %v825_v49  ;;  %v823_v33 = vpop.xlane.xlu0 %822 }
 0x2f0   :  { %941 = vst [vmem:[#allocation2 + $0x18] sm:$0xff] %v909_v30  ;;  %1360 = vrcp.f32 %v823_v33 }
 0x2f1   :  { %938 = vst [vmem:[#allocation2] sm:$0xff] %v906_v12 }
 0x2f2   :  { %v1353_v51 = vpop.eup %1352  ;;  %v829_v14 = vpop.xlane.xlu1 %828 }
 0x2f3   :  { %v908_v57 = vmul.f32 %v1353_v51, %v1821_v15  ;;  %1362 = vrcp.f32 %v829_v14  ;;  %v827_v53 = vpop.xlane.xlu0 %826 }
 0x2f4   :  { %1364 = vrcp.f32 %v827_v53 }
 0x2f5   :  { %v1355_v42 = vpop.eup %1354  ;;  %940 = vst [vmem:[#allocation2 + $0x10] sm:$0xff] %v908_v57 }
 0x2f6   :  { %v1357_v16 = vpop.eup %1356  ;;  %v911_v5 = vmul.f32 %v1355_v42, %v1826_v26  ;;  %v833_v27 = vpop.xlane.xlu1 %832 }
 0x2f7   :  { %v910_v7 = vmul.f32 %v1357_v16, %v1828_v31  ;;  %1366 = vrcp.f32 %v833_v27  ;;  %v831_v55 = vpop.xlane.xlu0 %830 }
 0x2f8   :  { %943 = vst [vmem:[#allocation2 + $0x28] sm:$0xff] %v911_v5  ;;  %1368 = vrcp.f32 %v831_v55 }
 0x2f9   :  { %v1359_v18 = vpop.eup %1358  ;;  %942 = vst [vmem:[#allocation2 + $0x20] sm:$0xff] %v910_v7 }
 0x2fa   :  { %v1361_v58 = vpop.eup %1360  ;;  %v913_v15 = vmul.f32 %v1359_v18, %v1834_v38  ;;  %v837_v52 = vpop.xlane.xlu1 %836 }
 0x2fb   :  { %v912_v20 = vmul.f32 %v1361_v58, %v1836_v40  ;;  %1370 = vrcp.f32 %v837_v52  ;;  %v835_v29 = vpop.xlane.xlu0 %834 }
 0x2fc   :  { %945 = vst [vmem:[#allocation2 + $0x38] sm:$0xff] %v913_v15  ;;  %1372 = vrcp.f32 %v835_v29 }
 0x2fd   :  { %v1363_v26 = vpop.eup %1362  ;;  %944 = vst [vmem:[#allocation2 + $0x30] sm:$0xff] %v912_v20 }
 0x2fe   :  { %v1365_v60 = vpop.eup %1364  ;;  %v915_v31 = vmul.f32 %v1363_v26, %v1842_v48  ;;  %v841_v22 = vpop.xlane.xlu1 %840 }
 0x2ff   :  { %v914_v62 = vmul.f32 %v1365_v60, %v1844_v50  ;;  %1374 = vrcp.f32 %v841_v22  ;;  %v839_v61 = vpop.xlane.xlu0 %838 }
 0x300   :  { %947 = vst [vmem:[#allocation2 + $0x48] sm:$0xff] %v915_v31  ;;  %1376 = vrcp.f32 %v839_v61 }
 0x301   :  { %v1367_v38 = vpop.eup %1366  ;;  %946 = vst [vmem:[#allocation2 + $0x40] sm:$0xff] %v914_v62 }
 0x302   :  { %v1369_v24 = vpop.eup %1368  ;;  %v917_v40 = vmul.f32 %v1367_v38, %v1850_v59  ;;  %v845_v0 = vpop.xlane.xlu1 %844 }
 0x303   :  { %v916_v4 = vmul.f32 %v1369_v24, %v1852_v32  ;;  %1378 = vrcp.f32 %v845_v0  ;;  %v843_v9 = vpop.xlane.xlu0 %842 }
 0x304   :  { %949 = vst [vmem:[#allocation2 + $0x58] sm:$0xff] %v917_v40  ;;  %1380 = vrcp.f32 %v843_v9 }
 0x305   :  { %v1371_v48 = vpop.eup %1370  ;;  %948 = vst [vmem:[#allocation2 + $0x50] sm:$0xff] %v916_v4 }
 0x306   :  { %v1373_v11 = vpop.eup %1372  ;;  %v919_v50 = vmul.f32 %v1371_v48, %v1858_v37  ;;  %v849_v6 = vpop.xlane.xlu1 %848 }
 0x307   :  { %v918_v45 = vmul.f32 %v1373_v11, %v1860_v3  ;;  %1382 = vrcp.f32 %v849_v6  ;;  %v847_v17 = vpop.xlane.xlu0 %846 }
 0x308   :  { %951 = vst [vmem:[#allocation2 + $0x68] sm:$0xff] %v919_v50  ;;  %1384 = vrcp.f32 %v847_v17 }
 0x309   :  { %v1375_v59 = vpop.eup %1374  ;;  %950 = vst [vmem:[#allocation2 + $0x60] sm:$0xff] %v918_v45 }
 0x30a   :  { %v1377_v8 = vpop.eup %1376  ;;  %v921_v32 = vmul.f32 %v1375_v59, %v1866_v43  ;;  %v853_v19 = vpop.xlane.xlu1 %852 }
 0x30b   :  { %v920_v21 = vmul.f32 %v1377_v8, %v1868_v13  ;;  %1386 = vrcp.f32 %v853_v19  ;;  %v851_v10 = vpop.xlane.xlu0 %850 }
 0x30c   :  { %953 = vst [vmem:[#allocation2 + $0x78] sm:$0xff] %v921_v32  ;;  %1388 = vrcp.f32 %v851_v10 }
 0x30d   :  { %v1379_v37 = vpop.eup %1378  ;;  %952 = vst [vmem:[#allocation2 + $0x70] sm:$0xff] %v920_v21 }
 0x30e   :  { %v1381_v30 = vpop.eup %1380  ;;  %v923_v3 = vmul.f32 %v1379_v37, %v1874_v23  ;;  %v857_v49 = vpop.xlane.xlu1 %856 }
 0x30f   :  { %v922_v12 = vmul.f32 %v1381_v30, %v1876_v47  ;;  %1390 = vrcp.f32 %v857_v49  ;;  %v855_v33 = vpop.xlane.xlu0 %854 }
 0x310   :  { %955 = vst [vmem:[#allocation2 + $0x88] sm:$0xff] %v923_v3  ;;  %1392 = vrcp.f32 %v855_v33 }
 0x311   :  { %v1383_v43 = vpop.eup %1382  ;;  %954 = vst [vmem:[#allocation2 + $0x80] sm:$0xff] %v922_v12 }
 0x312   :  { %v1385_v51 = vpop.eup %1384  ;;  %v925_v13 = vmul.f32 %v1383_v43, %v1882_v34  ;;  %v861_v14 = vpop.xlane.xlu1 %860 }
 0x313   :  { %v924_v57 = vmul.f32 %v1385_v51, %v1884_v36  ;;  %1394 = vrcp.f32 %v861_v14  ;;  %v859_v53 = vpop.xlane.xlu0 %858 }
 0x314   :  { %957 = vst [vmem:[#allocation2 + $0x98] sm:$0xff] %v925_v13  ;;  %1396 = vrcp.f32 %v859_v53 }
 0x315   :  { %v1387_v23 = vpop.eup %1386  ;;  %956 = vst [vmem:[#allocation2 + $0x90] sm:$0xff] %v924_v57 }
 0x316   :  { %v1389_v42 = vpop.eup %1388  ;;  %v927_v47 = vmul.f32 %v1387_v23, %v1890_v44  ;;  %v865_v16 = vpop.xlane.xlu1 %864 }
 0x317   :  { %v926_v5 = vmul.f32 %v1389_v42, %v1892_v46  ;;  %1398 = vrcp.f32 %v865_v16  ;;  %v863_v27 = vpop.xlane.xlu0 %862 }
 0x318   :  { %959 = vst [vmem:[#allocation2 + $0xa8] sm:$0xff] %v927_v47  ;;  %1400 = vrcp.f32 %v863_v27 }
 0x319   :  { %v1391_v34 = vpop.eup %1390  ;;  %958 = vst [vmem:[#allocation2 + $0xa0] sm:$0xff] %v926_v5 }
 0x31a   :  { %v1393_v7 = vpop.eup %1392  ;;  %v929_v36 = vmul.f32 %v1391_v34, %v1898_v54  ;;  %v869_v55 = vpop.xlane.xlu1 %868 }
 0x31b   :  { %v928_v18 = vmul.f32 %v1393_v7, %v1900_v56  ;;  %1402 = vrcp.f32 %v869_v55  ;;  %v867_v58 = vpop.xlane.xlu0 %866 }
 0x31c   :  { %961 = vst [vmem:[#allocation2 + $0xb8] sm:$0xff] %v929_v36  ;;  %1404 = vrcp.f32 %v867_v58 }
 0x31d   :  { %v1395_v44 = vpop.eup %1394  ;;  %960 = vst [vmem:[#allocation2 + $0xb0] sm:$0xff] %v928_v18 }
 0x31e   :  { %v1397_v15 = vpop.eup %1396  ;;  %v931_v46 = vmul.f32 %v1395_v44, %v1905_v63  ;;  %v873_v52 = vpop.xlane.xlu1 %872 }
 0x31f   :  { %v930_v20 = vmul.f32 %v1397_v15, %v1907_v35  ;;  %1406 = vrcp.f32 %v873_v52  ;;  %v871_v29 = vpop.xlane.xlu0 %870 }
 0x320   :  { %963 = vst [vmem:[#allocation2 + $0xc8] sm:$0xff] %v931_v46  ;;  %1408 = vrcp.f32 %v871_v29 }
 0x321   :  { %v1399_v54 = vpop.eup %1398  ;;  %962 = vst [vmem:[#allocation2 + $0xc0] sm:$0xff] %v930_v20 }
 0x322   :  { %v1401_v26 = vpop.eup %1400  ;;  %v933_v56 = vmul.f32 %v1399_v54, %v1911_v28 }
 0x323   :  { %v932_v60 = vmul.f32 %v1401_v26, %v1913_v1 }
 0x324   :  { %965 = vst [vmem:[#allocation2 + $0xd8] sm:$0xff] %v933_v56 }
 0x325   :  { %v1403_v31 = vpop.eup %1402  ;;  %964 = vst [vmem:[#allocation2 + $0xd0] sm:$0xff] %v932_v60 }
 0x326   :  { %v1405_v22 = vpop.eup %1404  ;;  %v935_v63 = vmul.f32 %v1403_v31, %v1917_v25 }
 0x327   :  { %v934_v62 = vmul.f32 %v1405_v22, %v1919_v2 }
 0x328   :  { %967 = vst [vmem:[#allocation2 + $0xe8] sm:$0xff] %v935_v63 }
 0x329   :  { %v1407_v35 = vpop.eup %1406  ;;  %966 = vst [vmem:[#allocation2 + $0xe0] sm:$0xff] %v934_v62 }
 0x32a   :  { %v1409_v61 = vpop.eup %1408  ;;  %v937_v38 = vmul.f32 %v1407_v35, %v1923_v39 }
 0x32b   :  { %v936_v28 = vmul.f32 %v1409_v61, %v1925_v41 }
 0x32c   :  { %969 = vst [vmem:[#allocation2 + $0xf8] sm:$0xff] %v937_v38 }
 0x32d   :  { %968 = vst [vmem:[#allocation2 + $0xf0] sm:$0xff] %v936_v28 }
 0x32e   :  { %1421 = shalt.err (!%p1418_p4)
}
 0x32f   :  { %s1422_s30 = scalar_lea.hbm %s1975_s2, 4096 }
 0x330   :  { %p1423_p5 = scmp.ne.s32.totalorder %s1975_s2, %s1422_s30  ;;  %p1426_p6 = scmp.lt.u32.totalorder %s1422_s30, %s1975_s2 }
 0x332   :  { %p1428_p7 = pnand %p1426_p6, %p1423_p5 }
 0x334   :  { %1431 = shalt.err (!%p1428_p7)
}
 0x335   :  { %s1435_s7 = smov 128   ;;  %s1436_s8 = smov 8  }
 0x336   :  { %981 = dma.vmem_to_hbm [thread:$0]  %s976_s26, 4096, %s1975_s2, [#allocation3], %s1435_s7, %s1435_s7, %s1436_s8  }
 0x337   :  { %1432 = dma.done.wait [#allocation3], 4096  }
 0x338   :  { %1433 = vsyncadd [#allocation3], 4294963200 }
 0x339   :  { %985 = vsyncpa [#allocation3], 1 }

</bundles_post_ra>
